<compile_context>
chip_gen: v6e
topology: v6e:2x2x1
jax: 0.10.0
libtpu: 0.0.40
codegen_flags: <defaults>
</compile_context>

<pallas_src>
import jax
import jax.numpy as jnp
from jax.experimental import pallas as pl
from jax.experimental.pallas import tpu as pltpu

EPS = 1e-5  # nn.GroupNorm default eps


def _groupnorm1_kernel(x_ref, w_ref, b_ref, o_ref):
    # x_ref: (Bt, Cf, L) -- Bt whole samples, lane-dense last dim.
    x = x_ref[...].astype(jnp.float32)
    # Single-group, per-sample reduction over all of (Cf, L).
    mean = jnp.mean(x, axis=(1, 2), keepdims=True)
    xc = x - mean                                   # reuse centered tensor
    var = jnp.mean(xc * xc, axis=(1, 2), keepdims=True)
    inv = jax.lax.rsqrt(var + EPS)
    xn = xc * inv
    # (Cf, 1) affine broadcasts over batch-tile and lanes directly on the VPU.
    w = w_ref[...].astype(jnp.float32)
    b = b_ref[...].astype(jnp.float32)
    o_ref[...] = (xn * w + b).astype(o_ref.dtype)


def _fold_factor(C, H):
    """Smallest h dividing H such that C*h is a multiple of 8 (sublane-dense)."""
    if C % 8 == 0:
        return 1
    for h in range(1, H + 1):
        if H % h == 0 and (C * h) % 8 == 0:
            return h
    return 1


def _pick_batch_tile(B, per_sample_bytes, target_bytes=2 << 20):
    """Largest divisor of B giving ~target-sized blocks, keeping >=2 grid steps."""
    cap = max(1, target_bytes // max(per_sample_bytes, 1))
    if B >= 2:
        cap = min(cap, B // 2)  # leave >=2 grid steps for v7x's 2 TensorCores
    cap = int(max(1, min(cap, B)))
    for bt in range(cap, 0, -1):
        if B % bt == 0:
            return bt
    return 1


def layer_norm_4d(x, weight, bias):
    """GroupNorm(1, C) over NCHW input with affine params of shape (C,)."""
    B, C, H, W = x.shape

    # Lane-dense flattening with channel structure preserved:
    # row cf of the (Cf, L) plane belongs to channel cf // h.
    h = _fold_factor(C, H)
    Cf, L = C * h, (H // h) * W
    x3 = x.reshape(B, Cf, L)
    w2 = jnp.repeat(weight, h).reshape(Cf, 1)
    b2 = jnp.repeat(bias, h).reshape(Cf, 1)

    itemsize = jnp.dtype(x.dtype).itemsize
    per_sample_bytes = Cf * L * itemsize
    Bt = _pick_batch_tile(B, per_sample_bytes)
    grid = (B // Bt,)

    # NOTE: a single sample much larger than a few MiB would need a spatially
    # tiled two-pass (sum / sum-of-squares) reduction to stay inside v7x's
    # 64 MiB VMEM once double-buffered; not needed at these sizes.
    block_bytes = Bt * per_sample_bytes
    param_bytes = 2 * Cf * jnp.dtype(weight.dtype).itemsize
    vmem_limit = int(1.25 * (4 * block_bytes + 4 * param_bytes))  # 2x in + 2x out
    vmem_limit = min(max(vmem_limit, 8 << 20), 96 << 20)

    out3 = pl.pallas_call(
        _groupnorm1_kernel,
        out_shape=jax.ShapeDtypeStruct((B, Cf, L), x.dtype),
        grid_spec=pltpu.PrefetchScalarGridSpec(
            num_scalar_prefetch=0,
            grid=grid,
            in_specs=[
                pl.BlockSpec((Bt, Cf, L), lambda i: (i, 0, 0)),
                pl.BlockSpec((Cf, 1), lambda i: (0, 0)),
                pl.BlockSpec((Cf, 1), lambda i: (0, 0)),
            ],
            out_specs=pl.BlockSpec((Bt, Cf, L), lambda i: (i, 0, 0)),
        ),
        compiler_params=pltpu.CompilerParams(
            dimension_semantics=("parallel",),
            vmem_limit_bytes=vmem_limit,
        ),
    )(x3, w2, b2)
    return out3.reshape(B, C, H, W)


def _reference(x, weight, bias):
    xf = x.astype(jnp.float32)
    mean = jnp.mean(xf, axis=(1, 2, 3), keepdims=True)
    var = jnp.mean((xf - mean) ** 2, axis=(1, 2, 3), keepdims=True)
    xn = (xf - mean) * jax.lax.rsqrt(var + EPS)
    return (xn * weight.reshape(1, -1, 1, 1) + bias.reshape(1, -1, 1, 1)).astype(x.dtype)


if __name__ == "__main__":
    key = jax.random.PRNGKey(0)
    kx, kw, kb = jax.random.split(key, 3)

    B, C, H, W = 2, 4, 16, 16
    x = jax.random.normal(kx, (B, C, H, W), dtype=jnp.float32)
    # nn.GroupNorm defaults are weight=1, bias=0; random values exercise affine.
    weight = jax.random.normal(kw, (C,), dtype=jnp.float32) * 0.1 + 1.0
    bias = jax.random.normal(kb, (C,), dtype=jnp.float32) * 0.1

    out = layer_norm_4d(x, weight, bias)
    out = jax.block_until_ready(out)

    ref = _reference(x, weight, bias)
    assert out.shape == (B, C, H, W)
    assert jnp.max(jnp.abs(out - ref)) < 1e-5
    print("KERNEL_OK")
</pallas_src>

<mosaic_0001>
module attributes {stable_mosaic.version = 11 : i64} {
  func.func @_groupnorm1_kernel(%arg0: i32, %arg1: memref<1x8x128xf32, #tpu.memory_space<vmem>>, %arg2: memref<8x1xf32, #tpu.memory_space<vmem>>, %arg3: memref<8x1xf32, #tpu.memory_space<vmem>>, %arg4: memref<1x8x128xf32, #tpu.memory_space<vmem>>) attributes {dimension_semantics = [#tpu.dimension_semantics<parallel>], iteration_bounds = array<i64: 2>, scalar_prefetch = 0 : i64, scratch_operands = 0 : i64, tpu.core_type = #tpu.core_type<tc>, window_params = [{transform_indices = @transform_0, window_bounds = array<i64: 1, 8, 128>}, {pipeline_mode = #tpu.pipeline_mode<synchronous>, transform_indices = @transform_1, window_bounds = array<i64: 8, 1>}, {pipeline_mode = #tpu.pipeline_mode<synchronous>, transform_indices = @transform_2, window_bounds = array<i64: 8, 1>}, {transform_indices = @transform_3, window_bounds = array<i64: 1, 8, 128>}]} {
    %c0 = arith.constant 0 : index
    %c0_0 = arith.constant 0 : index
    %c0_1 = arith.constant 0 : index
    %0 = vector.load %arg1[%c0, %c0_0, %c0_1] : memref<1x8x128xf32, #tpu.memory_space<vmem>>, vector<1x8x128xf32>
    %cst = arith.constant dense<0.000000e+00> : vector<1xf32>
    %1 = vector.multi_reduction <add>, %0, %cst [1, 2] : vector<1x8x128xf32> to vector<1xf32>
    %2 = vector.shape_cast %1 : vector<1xf32> to vector<1x1x1xf32>
    %cst_2 = arith.constant 1.024000e+03 : f32
    %3 = vector.broadcast %cst_2 : f32 to vector<1x1x1xf32>
    %4 = arith.divf %2, %3 : vector<1x1x1xf32>
    %5 = vector.broadcast %4 : vector<1x1x1xf32> to vector<1x8x128xf32>
    %6 = arith.subf %0, %5 : vector<1x8x128xf32>
    %7 = arith.mulf %6, %6 : vector<1x8x128xf32>
    %cst_3 = arith.constant dense<0.000000e+00> : vector<1xf32>
    %8 = vector.multi_reduction <add>, %7, %cst_3 [1, 2] : vector<1x8x128xf32> to vector<1xf32>
    %9 = vector.shape_cast %8 : vector<1xf32> to vector<1x1x1xf32>
    %cst_4 = arith.constant 1.024000e+03 : f32
    %10 = vector.broadcast %cst_4 : f32 to vector<1x1x1xf32>
    %11 = arith.divf %9, %10 : vector<1x1x1xf32>
    %cst_5 = arith.constant 9.99999974E-6 : f32
    %12 = vector.broadcast %cst_5 : f32 to vector<1x1x1xf32>
    %13 = arith.addf %11, %12 : vector<1x1x1xf32>
    %14 = math.rsqrt %13 : vector<1x1x1xf32>
    %15 = vector.broadcast %14 : vector<1x1x1xf32> to vector<1x8x128xf32>
    %16 = arith.mulf %6, %15 : vector<1x8x128xf32>
    %c0_6 = arith.constant 0 : index
    %c0_7 = arith.constant 0 : index
    %17 = vector.load %arg2[%c0_6, %c0_7] : memref<8x1xf32, #tpu.memory_space<vmem>>, vector<8x1xf32>
    %c0_8 = arith.constant 0 : index
    %c0_9 = arith.constant 0 : index
    %18 = vector.load %arg3[%c0_8, %c0_9] : memref<8x1xf32, #tpu.memory_space<vmem>>, vector<8x1xf32>
    %19 = vector.shape_cast %17 : vector<8x1xf32> to vector<1x8x1xf32>
    %20 = vector.broadcast %19 : vector<1x8x1xf32> to vector<1x8x128xf32>
    %21 = arith.mulf %16, %20 : vector<1x8x128xf32>
    %22 = vector.shape_cast %18 : vector<8x1xf32> to vector<1x8x1xf32>
    %23 = vector.broadcast %22 : vector<1x8x1xf32> to vector<1x8x128xf32>
    %24 = arith.addf %21, %23 : vector<1x8x128xf32>
    %c0_10 = arith.constant 0 : index
    %c0_11 = arith.constant 0 : index
    %c0_12 = arith.constant 0 : index
    %25 = vector.load %arg4[%c0_10, %c0_11, %c0_12] : memref<1x8x128xf32, #tpu.memory_space<vmem>>, vector<1x8x128xf32>
    tpu.vector_store %arg4[%c0_10, %c0_11, %c0_12], %24 {strides = array<i32>} : memref<1x8x128xf32, #tpu.memory_space<vmem>>, vector<1x8x128xf32>,
    return
  }
  func.func @transform_0(%arg0: i32) -> (i32, i32, i32) {
    %c0_i32 = arith.constant 0 : i32
    %c0_i32_0 = arith.constant 0 : i32
    %c0_i32_1 = arith.constant 0 : i32
    return %arg0, %c0_i32, %c0_i32_0 : i32, i32, i32
  }
  func.func @transform_1(%arg0: i32) -> (i32, i32) {
    %c0_i32 = arith.constant 0 : i32
    %c0_i32_0 = arith.constant 0 : i32
    %c0_i32_1 = arith.constant 0 : i32
    return %c0_i32, %c0_i32_0 : i32, i32
  }
  func.func @transform_2(%arg0: i32) -> (i32, i32) {
    %c0_i32 = arith.constant 0 : i32
    %c0_i32_0 = arith.constant 0 : i32
    %c0_i32_1 = arith.constant 0 : i32
    return %c0_i32, %c0_i32_0 : i32, i32
  }
  func.func @transform_3(%arg0: i32) -> (i32, i32, i32) {
    %c0_i32 = arith.constant 0 : i32
    %c0_i32_0 = arith.constant 0 : i32
    %c0_i32_1 = arith.constant 0 : i32
    return %arg0, %c0_i32, %c0_i32_0 : i32, i32, i32
  }
}

</mosaic_0001>

<bundles_post_ra>
// kernel: tpu_custom_call.1
= control target key start
LH: loop header
LB: loop body
LE: loop exit
PB: predicated region body
PF: predicated region fallthrough
CT: control target
= control target key end

     0   :  { %8 = vsyncpa [#allocation3], 0  ;;  %s510_s0 = inlined_call_operand.vmem [shape: f32[2,8,128], index: 0, kind: input, shape index: {}]   ;;  %s511_s1 = inlined_call_operand.vmem [shape: f32[8,1], index: 1, kind: input, shape index: {}]   ;;  %s512_s2 = inlined_call_operand.vmem [shape: f32[8,1], index: 2, kind: input, shape index: {}]   ;;  %s513_s3 = inlined_call_operand.hbm [shape: f32[2,8,128], index: 3, kind: output, shape index: {}]  }
   0x1   :  { %10 = vsyncpa [#allocation3 + $0x1], 0  ;;  %s417_s12 = smov 0   ;;  %s419_s13 = smov 0  }
   0x2   :  { %s421_s14 = smov 0   ;;  %s423_s15 = smov 0  }
   0x3 LB: > { %s438_s16 = sadd.s32 4294967295, %s393_s15   ;;  %s279_s17 = sadd.s32 4294967294, %s393_s15   ;;  %s393_s15 = sphi %s423_s15, %s519_s15   ;;  %s389_s14 = sphi %s421_s14, %s518_s14   ;;  %s385_s13 = sphi %s419_s13, %s517_s13   ;;  %s381_s12 = sphi %s417_s12, %s516_s12  }
   0x4   : > { %s442_s18 = sadd.s32 1, %s393_s15   ;;  %s91_s19 = sadd.s32 1, %s389_s14 }
   0x5   : > { %s88_s20 = ssub.s32 %s393_s15, %s442_s18  ;;  %p101_p0 = scmp.ne.s32.totalorder %s389_s14, %s385_s13 }
   0x6   : > { %p89_p1 = scmp.eq.s32.totalorder %s88_s20, 0  ;;  %p102_p2 = scmp.eq.s32.totalorder %s438_s16, 1 }
   0x7   : > { %p107_p3 = scmp.ne.s32.totalorder %s385_s13, %s381_s12  ;;  %p108_p4 = scmp.eq.s32.totalorder %s279_s17, 1 }
   0x8   : > { %s453_s21 = scalar_select %p89_p1, %s389_s14, %s91_s19  }
   0x9   : > { %p455_p5 = por %p102_p2, %p101_p0  ;;  %p459_p6 = por %p108_p4, %p107_p3 }
   0xa   : > { %p282_p7 = scmp.ge.s32.totalorder %s393_s15, 1  ;;  %p139_p8 = scmp.lt.s32.totalorder %s393_s15, 3 }
   0xc   : > { %p140_p9 = pnand %p282_p7, %p139_p8 }
   0xd   : > { %p162_p10 = scmp.lt.s32.totalorder (!%p140_p9), %s438_s16, 1  ;;  %s159_s6 = sand.u32 (!%p140_p9), 1, %s385_s13  }
   0xe   : > { %143 = sbr.rel (%p140_p9) target bundleno = 367 (0x16f), region = 32  ;;  %s283_s7 = sshll.u32 (!%p140_p9), %s159_s6, 3 }
   0xf   : > { %s286_s8 = sshll.u32 (!%p140_p9), %s438_s16, 7  ;;  %s161_s9 = scalar_lea.vmem (!%p140_p9), [#allocation2], %s283_s7 }
  0x10   : > { %s220_s10 = sshll.u32 (!%p140_p9), %s161_s9, 4  ;;  %s218_s19 = scalar_lea.hbm (!%p140_p9), %s513_s3, %s286_s8  ;;  %s221_s10 = int_to_ptr.vmem [resolvable:$true] %s220_s10 }
  0x11   : > { %s207_s20 = scalar_lea.sflag (!%p140_p9), [#allocation3], %s159_s6 }
  0x13   : > { %s163_s24 = scalar_select %p162_p10, %s438_s16, 1  ;;  %v191_v1 = vld [vmem:[%s511_s1] sm:$0xff]  ;;  %v395_v2 = vmov 0  }
  0x14   : > { %329 = vset.pattern.permute.xlu1 %v395_v2  ;;  %330 = vset.pattern.permute.xlu0 %v395_v2  ;;  %v192_v3 = vld [vmem:[%s512_s2] sm:$0xff] }
  0x15   : > { %s284_s25 = sshll.u32 %s163_s24, 3  ;;  %195 = vperm.xlu1 %329, %v191_v1   ;;  %s333_s24 = scalar_lea.vmem %s221_s10, 128 }
  0x16   : > { %s165_s28 = scalar_lea.vmem %s510_s0, %s284_s25  ;;  %p334_p11 = scmp.ne.s32.totalorder %s221_s10, %s333_s24 }
  0x17   : > { %v166_v0 = vld [vmem:[%s165_s28] sm:$0xff]  ;;  %s396_s25 = smov [#allocation2]  }
  0x18   : > { %167 = vadd.xlane.f32.xlu0 %v166_v0  ;;  %p335_p12 = pnand %p334_p11, %p455_p5  ;;  %s337_s26 = sshll.u32 %s396_s25, 4  ;;  %s338_s26 = int_to_ptr.vmem [resolvable:$false] %s337_s26 }
  0x19   : > { %201 = vperm.xlu1 %329, %v192_v3   ;;  %s339_s16 = scalar_lea.vmem %s338_s26, 256  ;;  %p340_p0 = scmp.lt.s32.totalorder %s221_s10, %s338_s26 }
  0x1a   : > { %p336_p13 = pneg %p335_p12  ;;  %p341_p1 = scmp.lt.s32.totalorder %s339_s16, %s333_s24 }
  0x1c   : > { %p342_p2 = por %p341_p1, %p340_p0 }
  0x1e   : > { %p343_p3 = pnand %p342_p2, %p336_p13 }
  0x90   : > { %v196_v23 = vpop.permute.xlu1 %195 }
  0x94   : > { %v202_v27 = vpop.permute.xlu1 %201 }
  0xa1   : > { %v168_v4 = vpop.xlane.xlu0 %167 }
  0xa2   : > { %v169_v5 = vrot.slane %v168_v4, 4 }
  0xa4   : > { %v170_v6 = vadd.f32 %v169_v5, %v168_v4 }
  0xa6   : > { %v171_v7 = vrot.slane %v170_v6, 2 }
  0xa8   : > { %v172_v8 = vadd.f32 %v171_v7, %v170_v6 }
  0xaa   : > { %v173_v9 = vrot.slane %v172_v8, 1 }
  0xac   : > { %v174_v10 = vadd.f32 %v173_v9, %v172_v8 }
  0xae   : > { %v176_v11 = vmul.f32 0.0009765625, %v174_v10 }
  0xb0   : > { %v177_v12 = vsub.f32 %v166_v0, %v176_v11 }
  0xb2   : > { %v178_v13 = vmul.f32 %v177_v12, %v177_v12 }
  0xb4   : > { %179 = vadd.xlane.f32.xlu0 %v178_v13 }
 0x13d   : > { %v180_v14 = vpop.xlane.xlu0 %179 }
 0x13e   : > { %v181_v15 = vrot.slane %v180_v14, 4 }
 0x140   : > { %v182_v16 = vadd.f32 %v181_v15, %v180_v14 }
 0x142   : > { %v183_v17 = vrot.slane %v182_v16, 2 }
 0x144   : > { %v184_v18 = vadd.f32 %v183_v17, %v182_v16 }
 0x146   : > { %v185_v19 = vrot.slane %v184_v18, 1 }
 0x148   : > { %v186_v20 = vadd.f32 %v185_v19, %v184_v18 }
 0x14a   : > { %v187_v21 = vmul.f32 0.0009765625, %v186_v20 }
 0x14c   : > { %v188_v22 = vadd.f32 1e-05, %v187_v21 }
 0x14e   : > { %331 = vrsqrt.f32 %v188_v22 }
 0x15b   : > { %v332_v24 = vpop.eup %331 }
 0x15c   : > { %v190_v25 = vmul.f32 %v332_v24, %v177_v12 }
 0x15e   : > { %v198_v26 = vmul.f32 %v196_v23, %v190_v25 }
 0x160   : > { %v204_v28 = vadd.f32 %v202_v27, %v198_v26 }
 0x162   : > { %205 = vst [vmem:[%s161_s9] sm:$0xff] %v204_v28 }
 0x163   : > { %346 = shalt.err (!%p343_p3)
}
 0x164   : > { %s347_s27 = scalar_lea.hbm %s218_s19, 128  ;;  %s351_s30 = scalar_lea.hbm %s513_s3, 256 }
 0x165   : > { %p348_p4 = scmp.ne.s32.totalorder %s218_s19, %s347_s27  ;;  %p352_p9 = scmp.lt.s32.totalorder %s218_s19, %s513_s3 }
 0x166   : > { %p353_p10 = scmp.lt.s32.totalorder %s351_s30, %s347_s27 }
 0x167   : > { %p349_p7 = pnand %p348_p4, %p455_p5 }
 0x168   : > { %p354_p11 = por %p353_p10, %p352_p9 }
 0x169   : > { %p350_p8 = pneg %p349_p7 }
 0x16b   : > { %p355_p12 = pnand %p354_p11, %p350_p8 }
 0x16d   : > { %358 = shalt.err (!%p355_p12)
}
 0x16e   : > { %289 = dma.vmem_to_hbm [thread:$0]  (%p455_p5), %s221_s10, 128, %s218_s19, %s207_s20  }
 0x16f PF: > { %p295_p13 = scmp.ge.s32.totalorder %s393_s15, 2  ;;  %s232_s6 = sand.u32 1, %s381_s12  }
 0x170   : > { %s233_s7 = scalar_lea.sflag [#allocation3], %s232_s6 }
 0x171   : > { %p292_p0 = pnand %p295_p13, %p459_p6 }
 0x173   : > { %p293_p1 = pneg %p292_p0 }
 0x175   : > { %376 = dma.done.wait (%p293_p1), %s233_s7, 128  }
 0x176   : > { %378 = vsyncadd (%p293_p1), %s233_s7, 4294967168  ;;  %p13_p2 = scmp.ge.s32.totalorder %s442_s18, 4   ;;  %s516_s12 = smov %s385_s13 }
 0x177   : > { %s517_s13 = smov %s389_s14  ;;  %s518_s14 = smov %s453_s21 }
 0x178   : > { %s519_s15 = smov %s442_s18  ;;  %15 = sbr.rel (!%p13_p2) target bundleno = 3 (0x3), region = 67 }
 0x17d   :  { %238 = vsyncpa [#allocation3], 1 }
 0x17e   :  { %240 = vsyncpa [#allocation3 + $0x1], 1 }

</bundles_post_ra>
